<compile_context>
chip_gen: v5e
topology: v5e:2x2
jax: 0.10.0
libtpu: 0.0.40
codegen_flags: <defaults>
</compile_context>

<pallas_src>
import jax
import jax.numpy as jnp
import numpy as np
from jax.experimental import pallas as pl
from jax.experimental.pallas import tpu as pltpu


def _fm_partial_kernel(x_ref, rhs_ref, v2sum_ref, lin_ref, psum_ref):
    """Per-batch-tile pass.

    x_ref    : (bt, p)     feature tile (pipelined over the batch grid)
    rhs_ref  : (p, 1+k)    [w_col | V.T], resident across the grid
    v2sum_ref: (1, p)      sum_j V[j,:]^2, resident across the grid
    lin_ref  : (bt, 1)     per-row linear part x @ w (output, tiled over batch)
    psum_ref : (1, 1)      global 0.5*sum(inter1^2 - inter2) accumulator
    """
    i = pl.program_id(0)

    @pl.when(i == 0)
    def _init():
        psum_ref[...] = jnp.zeros_like(psum_ref)

    x = x_ref[...]                                                   # (bt, p)
    # Single fused GEMM: column 0 is the linear part, columns 1..k are inter1.
    res = jnp.dot(x, rhs_ref[...], preferred_element_type=jnp.float32)  # (bt, 1+k)
    lin = res[:, 0:1]                                                # (bt, 1)
    lin_ref[...] = lin

    # sum(inter1^2) for this tile without any offset lane-slice:
    #   sum(res^2) - sum(lin^2)
    sum_inter1_sq = jnp.sum(res * res) - jnp.sum(lin * lin)
    # Elementwise work stays in f32 (v5e has no bf16 VPU).
    xf = x if x.dtype == jnp.float32 else x.astype(jnp.float32)
    sum_inter2 = jnp.sum((xf * xf) * v2sum_ref[...])
    psum_ref[...] = psum_ref[...] + 0.5 * (sum_inter1_sq - sum_inter2)


def _fm_epilogue_kernel(lin_ref, s_ref, b_ref, o_ref):
    """Lane-dense epilogue: out = lin + bias + 0.5*global_sum (broadcast)."""
    o_ref[...] = lin_ref[...] + (s_ref[0, 0] + b_ref[0, 0])


def _round_up(a: int, m: int) -> int:
    return ((a + m - 1) // m) * m


def fm_forward(x, linear_w, linear_b, v, *, batch_tile=None):
    """FM forward.  x:(B,p), linear_w:(1,p), linear_b:(1,), v:(k,p) -> (B,1) f32."""
    B, p = x.shape
    k = v.shape[0]
    assert v.shape[1] == p and linear_w.shape == (1, p) and linear_b.shape == (1,)
    itemsize = x.dtype.itemsize

    # ---- tiny one-time layout prep (k*p elements; free glue) ---------------
    vt = jnp.transpose(v).astype(x.dtype)                     # (p, k)
    w_col = jnp.reshape(linear_w, (p, 1)).astype(x.dtype)     # (p, 1)
    rhs = jnp.concatenate([w_col, vt], axis=1)                # (p, 1+k) fused RHS
    v2sum = jnp.sum(v.astype(jnp.float32) ** 2, axis=0).reshape(1, p)  # (1, p)
    b_2d = jnp.reshape(linear_b, (1, 1)).astype(jnp.float32)  # (1, 1)

    # ---- batch tile choice ---------------------------------------------------
    if batch_tile is None:
        # ~2 MiB per x block: double-buffered inputs stay far below the 32 MiB
        # scoped-VMEM limit on every generation (v7x: 64 MiB physical).
        batch_tile = max(128, min(4096, (2 * 1024 * 1024) // (p * itemsize)))
    if B <= batch_tile:
        bt = _round_up(B, 8)                       # single tile
    else:
        bt = max(128, (batch_tile // 128) * 128)   # keeps lane-dense epilogue legal
    Bp = _round_up(B, bt)
    if Bp != B:
        # Zero rows contribute 0 to the global scalar; padded rows sliced off below.
        x = jnp.pad(x, ((0, Bp - B), (0, 0)))
    num_tiles = Bp // bt
    grid = (num_tiles,)

    cost = pl.CostEstimate(
        flops=2 * Bp * p * (1 + k) + 8 * Bp * p,
        transcendentals=0,
        bytes_accessed=Bp * p * itemsize + p * (1 + k) * itemsize
        + 4 * p + 2 * Bp * 4 + 8,
    )

    # ---- pass 1: fused GEMM + global-scalar accumulation ---------------------
    lin, psum = pl.pallas_call(
        _fm_partial_kernel,
        out_shape=(
            jax.ShapeDtypeStruct((Bp, 1), jnp.float32),   # per-row linear part
            jax.ShapeDtypeStruct((1, 1), jnp.float32),    # global 0.5*sum(...)
        ),
        grid=grid,
        in_specs=[
            pl.BlockSpec((bt, p), lambda i: (i, 0)),      # x tile (pipelined)
            pl.BlockSpec((p, 1 + k), lambda i: (0, 0)),   # [w | V.T], resident
            pl.BlockSpec((1, p), lambda i: (0, 0)),       # sum_j V^2, resident
        ],
        out_specs=(
            pl.BlockSpec((bt, 1), lambda i: (i, 0)),
            pl.BlockSpec((1, 1), lambda i: (0, 0)),       # resident accumulator
        ),
        compiler_params=pltpu.CompilerParams(
            # Global-scalar accumulator is carried across batch tiles -> the
            # batch axis must stay sequential here; the epilogue parallelizes.
            dimension_semantics=("arbitrary",),
            vmem_limit_bytes=32 * 1024 * 1024,
        ),
        cost_estimate=cost,
    )(x, rhs, v2sum)

    # ---- pass 2: lane-dense epilogue (batch on the lane axis) ----------------
    lin_rows = jnp.reshape(lin, (1, Bp))                  # free layout plumbing
    out_rows = pl.pallas_call(
        _fm_epilogue_kernel,
        out_shape=jax.ShapeDtypeStruct((1, Bp), jnp.float32),
        grid=grid,
        in_specs=[
            pl.BlockSpec((1, bt), lambda i: (0, i)),
            pl.BlockSpec((1, 1), lambda i: (0, 0),
                         memory_space=pltpu.MemorySpace.SMEM),   # global scalar
            pl.BlockSpec((1, 1), lambda i: (0, 0),
                         memory_space=pltpu.MemorySpace.SMEM),   # bias
        ],
        out_specs=pl.BlockSpec((1, bt), lambda i: (0, i)),
        compiler_params=pltpu.CompilerParams(
            dimension_semantics=("parallel",),            # 2-TC shardable on v7x
            vmem_limit_bytes=32 * 1024 * 1024,
        ),
    )(lin_rows, psum, b_2d)

    return jnp.reshape(out_rows, (Bp, 1))[:B]


def fm_reference_f64(x, linear_w, linear_b, v):
    """Exact (float64, numpy) mirror of the PyTorch fm_layer."""
    x64 = np.asarray(x, dtype=np.float64)
    w64 = np.asarray(linear_w, dtype=np.float64)
    b64 = np.asarray(linear_b, dtype=np.float64)
    v64 = np.asarray(v, dtype=np.float64)
    linear_part = x64 @ w64.T + b64                        # (B, 1)
    inter1 = x64 @ v64.T                                   # (B, k)
    inter2 = (x64 ** 2) @ (v64 ** 2).T                     # (B, k)
    return linear_part + 0.5 * np.sum(inter1 ** 2 - inter2)


if __name__ == "__main__":
    # Small shapes, but enough batch to exercise a 4-step batch grid with the
    # cross-tile global-scalar accumulator (bt=128).
    B, p, k = 512, 32, 16
    key = jax.random.PRNGKey(0)
    kx, kw, kb, kv = jax.random.split(key, 4)

    x = jax.random.normal(kx, (B, p), dtype=jnp.float32)
    linear_w = jax.random.normal(kw, (1, p), dtype=jnp.float32) * 0.1   # nn.Linear(p,1).weight
    linear_b = jax.random.normal(kb, (1,), dtype=jnp.float32) * 0.1     # nn.Linear(p,1).bias
    v = jax.random.normal(kv, (k, p), dtype=jnp.float32)                # nn.Parameter randn(k,p)

    out = fm_forward(x, linear_w, linear_b, v, batch_tile=128)
    out = jax.block_until_ready(out)
    assert out.shape == (B, 1)

    ref = fm_reference_f64(x, linear_w, linear_b, v)
    scale = max(float(np.max(np.abs(ref))), 1.0)
    err = float(np.max(np.abs(np.asarray(out, dtype=np.float64) - ref)))
    # The global sum(inter1^2 - inter2) term cancels heavily, so allow f32 /
    # MXU-decomposition accumulation noise relative to the dominant magnitude.
    assert err <= 2e-2 * scale, (err, scale)

    print("KERNEL_OK")
</pallas_src>

<mosaic_0001>
module attributes {stable_mosaic.version = 11 : i64} {
  func.func @_fm_partial_kernel(%arg0: i32, %arg1: memref<128x32xf32, #tpu.memory_space<vmem>>, %arg2: memref<32x17xf32, #tpu.memory_space<vmem>>, %arg3: memref<1x32xf32, #tpu.memory_space<vmem>>, %arg4: memref<128x1xf32, #tpu.memory_space<vmem>>, %arg5: memref<1x1xf32, #tpu.memory_space<vmem>>) attributes {dimension_semantics = [#tpu.dimension_semantics<arbitrary>], iteration_bounds = array<i64: 4>, scalar_prefetch = 0 : i64, scratch_operands = 0 : i64, tpu.core_type = #tpu.core_type<tc>, window_params = [{transform_indices = @transform_0, window_bounds = array<i64: 128, 32>}, {pipeline_mode = #tpu.pipeline_mode<synchronous>, transform_indices = @transform_1, window_bounds = array<i64: 32, 17>}, {pipeline_mode = #tpu.pipeline_mode<synchronous>, transform_indices = @transform_2, window_bounds = array<i64: 1, 32>}, {transform_indices = @transform_3, window_bounds = array<i64: 128, 1>}, {pipeline_mode = #tpu.pipeline_mode<synchronous>, transform_indices = @transform_4, window_bounds = array<i64: 1, 1>}]} {
    %c0_i32 = arith.constant 0 : i32
    %0 = arith.cmpi eq, %arg0, %c0_i32 : i32
    %1 = arith.extui %0 : i1 to i32
    %c0_i32_0 = arith.constant 0 : i32
    %2 = arith.cmpi ne, %1, %c0_i32_0 : i32
    scf.if %2 {
      %cst_16 = arith.constant 0.000000e+00 : f32
      %33 = vector.broadcast %cst_16 : f32 to vector<1x1xf32>
      %c0_17 = arith.constant 0 : index
      %c0_18 = arith.constant 0 : index
      %34 = vector.load %arg5[%c0_17, %c0_18] : memref<1x1xf32, #tpu.memory_space<vmem>>, vector<1x1xf32>
      tpu.vector_store %arg5[%c0_17, %c0_18], %33 {strides = array<i32>} : memref<1x1xf32, #tpu.memory_space<vmem>>, vector<1x1xf32>,
    } else {
    }
    %c0 = arith.constant 0 : index
    %c0_1 = arith.constant 0 : index
    %3 = vector.load %arg1[%c0, %c0_1] : memref<128x32xf32, #tpu.memory_space<vmem>>, vector<128x32xf32>
    %c0_2 = arith.constant 0 : index
    %c0_3 = arith.constant 0 : index
    %4 = vector.load %arg2[%c0_2, %c0_3] : memref<32x17xf32, #tpu.memory_space<vmem>>, vector<32x17xf32>
    %cst = arith.constant dense<0.000000e+00> : vector<128x17xf32>
    %5 = tpu.matmul %3, %4, %cst {dimension_numbers = #tpu.dot_dimension_numbers<[1], [0], [0], [1], [0, 0, 1, 1], [], []>} : vector<128x32xf32>, vector<32x17xf32>, vector<128x17xf32> -> vector<128x17xf32>
    %6 = vector.extract_strided_slice %5 {offsets = [0, 0], sizes = [128, 1], strides = [1, 1]} : vector<128x17xf32> to vector<128x1xf32>
    %c0_4 = arith.constant 0 : index
    %c0_5 = arith.constant 0 : index
    %7 = vector.load %arg4[%c0_4, %c0_5] : memref<128x1xf32, #tpu.memory_space<vmem>>, vector<128x1xf32>
    tpu.vector_store %arg4[%c0_4, %c0_5], %6 {strides = array<i32>} : memref<128x1xf32, #tpu.memory_space<vmem>>, vector<128x1xf32>,
    %8 = arith.mulf %5, %5 : vector<128x17xf32>
    %9 = vector.shape_cast %8 : vector<128x17xf32> to vector<1x128x17xf32>
    %cst_6 = arith.constant dense<0.000000e+00> : vector<1xf32>
    %10 = vector.multi_reduction <add>, %9, %cst_6 [1, 2] : vector<1x128x17xf32> to vector<1xf32>
    %11 = vector.shape_cast %10 : vector<1xf32> to vector<1x1x1xf32>
    %12 = vector.extract %11[0, 0, 0] : f32 from vector<1x1x1xf32>
    %13 = arith.mulf %6, %6 : vector<128x1xf32>
    %14 = vector.shape_cast %13 : vector<128x1xf32> to vector<1x128x1xf32>
    %cst_7 = arith.constant dense<0.000000e+00> : vector<1xf32>
    %15 = vector.multi_reduction <add>, %14, %cst_7 [1, 2] : vector<1x128x1xf32> to vector<1xf32>
    %16 = vector.shape_cast %15 : vector<1xf32> to vector<1x1x1xf32>
    %17 = vector.extract %16[0, 0, 0] : f32 from vector<1x1x1xf32>
    %18 = arith.subf %12, %17 : f32
    %19 = arith.mulf %3, %3 : vector<128x32xf32>
    %c0_8 = arith.constant 0 : index
    %c0_9 = arith.constant 0 : index
    %20 = vector.load %arg3[%c0_8, %c0_9] : memref<1x32xf32, #tpu.memory_space<vmem>>, vector<1x32xf32>
    %21 = vector.broadcast %20 : vector<1x32xf32> to vector<128x32xf32>
    %22 = arith.mulf %19, %21 : vector<128x32xf32>
    %23 = vector.shape_cast %22 : vector<128x32xf32> to vector<1x128x32xf32>
    %cst_10 = arith.constant dense<0.000000e+00> : vector<1xf32>
    %24 = vector.multi_reduction <add>, %23, %cst_10 [1, 2] : vector<1x128x32xf32> to vector<1xf32>
    %25 = vector.shape_cast %24 : vector<1xf32> to vector<1x1x1xf32>
    %26 = vector.extract %25[0, 0, 0] : f32 from vector<1x1x1xf32>
    %c0_11 = arith.constant 0 : index
    %c0_12 = arith.constant 0 : index
    %27 = vector.load %arg5[%c0_11, %c0_12] : memref<1x1xf32, #tpu.memory_space<vmem>>, vector<1x1xf32>
    %28 = arith.subf %18, %26 : f32
    %cst_13 = arith.constant 5.000000e-01 : f32
    %29 = arith.mulf %cst_13, %28 : f32
    %30 = vector.broadcast %29 : f32 to vector<1x1xf32>
    %31 = arith.addf %27, %30 : vector<1x1xf32>
    %c0_14 = arith.constant 0 : index
    %c0_15 = arith.constant 0 : index
    %32 = vector.load %arg5[%c0_14, %c0_15] : memref<1x1xf32, #tpu.memory_space<vmem>>, vector<1x1xf32>
    tpu.vector_store %arg5[%c0_14, %c0_15], %31 {strides = array<i32>} : memref<1x1xf32, #tpu.memory_space<vmem>>, vector<1x1xf32>,
    return
  }
  func.func @transform_0(%arg0: i32) -> (i32, i32) {
    %c0_i32 = arith.constant 0 : i32
    %c0_i32_0 = arith.constant 0 : i32
    return %arg0, %c0_i32 : i32, i32
  }
  func.func @transform_1(%arg0: i32) -> (i32, i32) {
    %c0_i32 = arith.constant 0 : i32
    %c0_i32_0 = arith.constant 0 : i32
    %c0_i32_1 = arith.constant 0 : i32
    return %c0_i32, %c0_i32_0 : i32, i32
  }
  func.func @transform_2(%arg0: i32) -> (i32, i32) {
    %c0_i32 = arith.constant 0 : i32
    %c0_i32_0 = arith.constant 0 : i32
    %c0_i32_1 = arith.constant 0 : i32
    return %c0_i32, %c0_i32_0 : i32, i32
  }
  func.func @transform_3(%arg0: i32) -> (i32, i32) {
    %c0_i32 = arith.constant 0 : i32
    %c0_i32_0 = arith.constant 0 : i32
    return %arg0, %c0_i32 : i32, i32
  }
  func.func @transform_4(%arg0: i32) -> (i32, i32) {
    %c0_i32 = arith.constant 0 : i32
    %c0_i32_0 = arith.constant 0 : i32
    %c0_i32_1 = arith.constant 0 : i32
    return %c0_i32, %c0_i32_0 : i32, i32
  }
}

</mosaic_0001>

<bundles_post_ra>
// kernel: tpu_custom_call.1
= control target key start
LH: loop header
LB: loop body
LE: loop exit
PB: predicated region body
PF: predicated region fallthrough
CT: control target
= control target key end

     0   :  { %10 = vsyncpa [#allocation3], 0  ;;  %s752_s15 = smov 0   ;;  %s956_s0 = inlined_call_operand.vmem [shape: f32[512,32], index: 0, kind: input, shape index: {}]   ;;  %s957_s1 = inlined_call_operand.vmem [shape: f32[32,17], index: 1, kind: input, shape index: {}]   ;;  %s958_s2 = inlined_call_operand.vmem [shape: f32[1,32], index: 2, kind: input, shape index: {}]   ;;  %s959_s3 = inlined_call_operand.vmem [shape: f32[512,1], index: 3, kind: output, shape index: {0}]   ;;  %s960_s4 = inlined_call_operand.hbm [shape: f32[1,1], index: 4, kind: output, shape index: {1}]  }
   0x1 LB: > { %s758_s16 = sadd.s32 4294967295, %s723_s15   ;;  %p624_p0 = scmp.ge.s32.totalorder %s723_s15, 1  ;;  %s723_s15 = sphi %s752_s15, %s16_s15  }
   0x2   : > { %p162_p1 = scmp.lt.s32.totalorder %s723_s15, 5 }
   0x4   : > { %p163_p2 = pnand %p624_p0, %p162_p1 }
   0x5   : > { %s625_s17 = sshll.u32 (!%p163_p2), %s758_s16, 4  ;;  %p629_p4 = scmp.ne.s32.totalorder (!%p163_p2), %s758_s16, 0 }
   0x6   : > { %166 = sbr.rel (%p163_p2) target bundleno = 404 (0x194), region = 32  ;;  %p189_p3 = scmp.lt.s32.totalorder (!%p163_p2), %s625_s17, 63 }
   0xb   : > { %s962_s17 = smov (!%p189_p3, %s625_s17), 63  ;;  %203 = sbr.rel (%p629_p4) target bundleno = 18 (0x12), region = 36 }
   0xc   : > { %s626_s18 = sshll.u32 %s962_s17, 3 }
   0xd   : > { %s766_s21 = scalar_lea.vmem %s956_s0, %s626_s18  ;;  %s771_s24 = scalar_lea.vmem %s959_s3, %s626_s18 }
  0x10   : > { %vm204_vm0 = vcmask 0   ;;  %v725_v0 = vmov 0.0  }
  0x11   : > { %205 = vst.msk [vmem:[#allocation2] sm:$0x1] %vm204_vm0, %v725_v0 }
  0x12 PF: > { %v225_v1 = vld [vmem:[%s957_s1 + $0x18] sm:$0xff]  ;;  %v224_v2 = vld [vmem:[%s957_s1 + $0x10] sm:$0xff]  ;;  %v206_v3 = vld [vmem:[%s766_s21] sm:$0xff]  ;;  %vm226_vm1 = vcmask 261120   ;;  %vm340_vm2 = vcmask 7168   ;;  %vm373_vm3 = vcmask 138240  }
  0x13   : > { %287 = vmatpush.msra.mxu0 %v225_v1  ;;  %650 = vmatpush.msra.mxu1 %v225_v1  ;;  %v223_v4 = vld [vmem:[%s957_s1 + $0x8] sm:$0xff]  ;;  %v455_v5 = vmul.f32 %v206_v3, %v206_v3  ;;  %v787_v6 = vld [vmem:[%s958_s2] ss:$0 sm:$0xff]  ;;  %v791_v9 = vld [vmem:[%s766_s21 + $0x10] sm:$0xff]  ;;  %s726_s14 = smov [#allocation2]   ;;  %vm536_vm4 = vcmask 0  }
  0x14   : > { %651 = vmatpush.msra.mxu2 %v225_v1  ;;  %v207_v7 = vld [vmem:[%s766_s21 + $0x8] sm:$0xff]  ;;  %652 = vmatpush.msra.mxu3 %v225_v1  ;;  %v222_v10 = vld [vmem:[%s957_s1] sm:$0xff]  ;;  %v457_v13 = vmul.f32 %v791_v9, %v791_v9  ;;  %v209_v25 = vld [vmem:[%s766_s21 + $0x18] sm:$0xff]  ;;  %s553_s17 = sshll.u32 %s726_s14, 4  ;;  %p672_p5 = scmp.eq.s32.totalorder %s758_s16, 3  ;;  %s554_s17 = int_to_ptr.vmem [resolvable:$true] %s553_s17 }
  0x15   : > { %288 = vmatpush.msra.mxu0 %v224_v2  ;;  %653 = vmatpush.msra.mxu1 %v224_v2  ;;  %v456_v8 = vmul.f32 %v207_v7, %v207_v7  ;;  %v475_v11 = vmul.f32 %v787_v6, %v455_v5  ;;  %v210_v12 = vld [vmem:[%s766_s21 + $0x20] sm:$0xff]  ;;  %v211_v18 = vld [vmem:[%s766_s21 + $0x28] sm:$0xff]  ;;  %v212_v26 = vld [vmem:[%s766_s21 + $0x30] sm:$0xff]  ;;  %v458_v28 = vmul.f32 %v209_v25, %v209_v25 }
  0x16   : > { %654 = vmatpush.msra.mxu2 %v224_v2  ;;  %655 = vmatpush.msra.mxu3 %v224_v2  ;;  %v459_v15 = vmul.f32 %v210_v12, %v210_v12  ;;  %v477_v17 = vmul.f32 %v787_v6, %v457_v13  ;;  %v214_v20 = vld [vmem:[%s766_s21 + $0x40] sm:$0xff]  ;;  %v460_v21 = vmul.f32 %v211_v18, %v211_v18  ;;  %v213_v31 = vld [vmem:[%s766_s21 + $0x38] sm:$0xff]  ;;  %v215_v39 = vld [vmem:[%s766_s21 + $0x48] sm:$0xff] }
  0x17   : > { %289 = vmatpush.msra.mxu0 %v223_v4  ;;  %656 = vmatpush.msra.mxu1 %v223_v4  ;;  %v476_v14 = vmul.f32 %v787_v6, %v456_v8  ;;  %v491_v16 = vsel %vm226_vm1, %v475_v11, 0.0  ;;  %v807_v22 = vld [vmem:[%s766_s21 + $0x60] sm:$0xff]  ;;  %v461_v29 = vmul.f32 %v212_v26, %v212_v26  ;;  %v478_v33 = vmul.f32 %v787_v6, %v458_v28  ;;  %v219_v43 = vld [vmem:[%s766_s21 + $0x68] sm:$0xff]  ;;  %v216_v46 = vld [vmem:[%s766_s21 + $0x50] sm:$0xff] }
  0x18   : > { %657 = vmatpush.msra.mxu2 %v223_v4  ;;  %658 = vmatpush.msra.mxu3 %v223_v4  ;;  %v494_v24 = vsel %vm226_vm1, %v477_v17, 0.0  ;;  %v479_v27 = vmul.f32 %v787_v6, %v459_v15  ;;  %v480_v32 = vmul.f32 %v787_v6, %v460_v21  ;;  %v462_v34 = vmul.f32 %v213_v31, %v213_v31  ;;  %v217_v51 = vld [vmem:[%s766_s21 + $0x58] sm:$0xff]  ;;  %v220_v61 = vld [vmem:[%s766_s21 + $0x70] sm:$0xff] }
  0x19   : > { %290 = vmatpush.msra.mxu0 %v222_v10  ;;  %659 = vmatpush.msra.mxu1 %v222_v10  ;;  %v492_v19 = vsel %vm226_vm1, %v476_v14, 0.0  ;;  %v463_v36 = vmul.f32 %v214_v20, %v214_v20  ;;  %v496_v37 = vsel %vm226_vm1, %v478_v33, 0.0  ;;  %v481_v38 = vmul.f32 %v787_v6, %v461_v29  ;;  %v221_v4 = vld [vmem:[%s766_s21 + $0x78] sm:$0xff]  ;;  %s555_s21 = sshll.u32 %s960_s4, 4  ;;  %s556_s21 = int_to_ptr.hbm [resolvable:$true] %s555_s21 }
  0x1a   : > { %630 = vmatmul.msk.f32.vlgmr.msra.gmra.mxu0 %vm226_vm1, %v206_v3  ;;  %v493_v23 = vadd.f32 %v492_v19, %v491_v16  ;;  %634 = vmatmul.msk.f32.vlgmr.msra.gmra.mxu1 %vm226_vm1, %v210_v12  ;;  %v498_v35 = vsel %vm226_vm1, %v479_v27, 0.0  ;;  %v500_v41 = vsel %vm226_vm1, %v480_v32, 0.0  ;;  %v464_v42 = vmul.f32 %v215_v39, %v215_v39 }
  0x1b   : > { %660 = vmatpush.msra.mxu2 %v222_v10  ;;  %661 = vmatpush.msra.mxu3 %v222_v10  ;;  %v482_v44 = vmul.f32 %v787_v6, %v462_v34  ;;  %v483_v47 = vmul.f32 %v787_v6, %v463_v36  ;;  %v502_v48 = vsel %vm226_vm1, %v481_v38, 0.0  ;;  %v465_v49 = vmul.f32 %v216_v46, %v216_v46 }
  0x1c   : > { %638 = vmatmul.msk.f32.vlgmr.msra.gmra.mxu2 %vm226_vm1, %v214_v20  ;;  %v495_v30 = vadd.f32 %v494_v24, %v493_v23  ;;  %642 = vmatmul.msk.f32.vlgmr.msra.gmra.mxu3 %vm226_vm1, %v807_v22  ;;  %v484_v52 = vmul.f32 %v787_v6, %v464_v42  ;;  %v466_v54 = vmul.f32 %v217_v51, %v217_v51 }
  0x1d   : > { %v504_v53 = vsel %vm226_vm1, %v482_v44, 0.0  ;;  %v506_v56 = vsel %vm226_vm1, %v483_v47, 0.0  ;;  %v485_v57 = vmul.f32 %v787_v6, %v465_v49  ;;  %v467_v8 = vmul.f32 %v807_v22, %v807_v22 }
  0x1e   : > { %v497_v40 = vadd.f32 %v496_v37, %v495_v30  ;;  %v508_v59 = vsel %vm226_vm1, %v484_v52, 0.0  ;;  %v486_v60 = vmul.f32 %v787_v6, %v466_v54  ;;  %v468_v14 = vmul.f32 %v219_v43, %v219_v43 }
  0x1f   : > { %v510_v63 = vsel %vm226_vm1, %v485_v57, 0.0  ;;  %v487_v13 = vmul.f32 %v787_v6, %v467_v8  ;;  %v469_v15 = vmul.f32 %v220_v61, %v220_v61  ;;  %v470_v20 = vmul.f32 %v221_v4, %v221_v4 }
  0x20   : > { %v499_v45 = vadd.f32 %v498_v35, %v497_v40  ;;  %v512_v1 = vsel %vm226_vm1, %v486_v60, 0.0  ;;  %v488_v19 = vmul.f32 %v787_v6, %v468_v14 }
  0x21   : > { %v514_v16 = vsel %vm226_vm1, %v487_v13, 0.0  ;;  %v489_v24 = vmul.f32 %v787_v6, %v469_v15  ;;  %v490_v30 = vmul.f32 %v787_v6, %v470_v20 }
  0x22   : > { %631 = vmatmul.msk.f32.gmra.mxu0 %vm226_vm1, %v207_v7  ;;  %635 = vmatmul.msk.f32.gmra.mxu1 %vm226_vm1, %v211_v18  ;;  %v501_v50 = vadd.f32 %v500_v41, %v499_v45 }
  0x23   : > { %v518_v34 = vsel %vm226_vm1, %v489_v24, 0.0  ;;  %v520_v38 = vsel %vm226_vm1, %v490_v30, 0.0 }
  0x24   : > { %639 = vmatmul.msk.f32.gmra.mxu2 %vm226_vm1, %v215_v39  ;;  %643 = vmatmul.msk.f32.gmra.mxu3 %vm226_vm1, %v219_v43  ;;  %v503_v55 = vadd.f32 %v502_v48, %v501_v50 }
  0x26   : > { %v505_v58 = vadd.f32 %v504_v53, %v503_v55 }
  0x28   : > { %v507_v62 = vadd.f32 %v506_v56, %v505_v58 }
  0x2a   : > { %632 = vmatmul.msk.f32.gmra.mxu0 %vm226_vm1, %v791_v9  ;;  %636 = vmatmul.msk.f32.gmra.mxu1 %vm226_vm1, %v212_v26  ;;  %v509_v0 = vadd.f32 %v508_v59, %v507_v62 }
  0x2c   : > { %640 = vmatmul.msk.f32.gmra.mxu2 %vm226_vm1, %v216_v46  ;;  %644 = vmatmul.msk.f32.gmra.mxu3 %vm226_vm1, %v220_v61  ;;  %v511_v2 = vadd.f32 %v510_v63, %v509_v0 }
  0x2e   : > { %v513_v3 = vadd.f32 %v512_v1, %v511_v2 }
  0x30   : > { %v515_v26 = vadd.f32 %v514_v16, %v513_v3 }
  0x32   : > { %633 = vmatmul.msk.f32.gmra.mxu0 %vm226_vm1, %v209_v25  ;;  %637 = vmatmul.msk.f32.gmra.mxu1 %vm226_vm1, %v213_v31  ;;  %v516_v31 = vsel %vm226_vm1, %v488_v19, 0.0 }
  0x33   : > { %v517_v33 = vadd.f32 %v516_v31, %v515_v26 }
  0x34   : > { %641 = vmatmul.msk.f32.gmra.mxu2 %vm226_vm1, %v217_v51  ;;  %645 = vmatmul.msk.f32.gmra.mxu3 %vm226_vm1, %v221_v4 }
  0x35   : > { %v519_v42 = vadd.f32 %v518_v34, %v517_v33 }
  0x37   : > { %v521_v49 = vadd.f32 %v520_v38, %v519_v42 }
  0x39   : > { %522 = vadd.xlane.f32.xlu1 %v521_v49 }
  0x97   : > { %v292_v5 = vpop.f32.mrf.mxu0  ;;  %v304_v7 = vpop.f32.mrf.mxu1 }
  0x98   : > { %341 = vst.msk [vmem:[%s771_s24] sm:$0xff] %vm340_vm2, %v292_v5  ;;  %v357_v25 = vmul.f32 %v292_v5, %v292_v5  ;;  %v361_v43 = vmul.f32 %v304_v7, %v304_v7 }
  0x99   : > { %345 = vst.msk [vmem:[%s771_s24 + $0x20] sm:$0xff] %vm340_vm2, %v304_v7 }
  0x9a   : > { %v374_v32 = vsel %vm373_vm3, %v357_v25, 0.0  ;;  %v414_v35 = vsel %vm340_vm2, %v357_v25, 0.0  ;;  %v381_v55 = vsel %vm373_vm3, %v361_v43, 0.0  ;;  %v421_v56 = vsel %vm340_vm2, %v361_v43, 0.0 }
  0x9f   : > { %v295_v9 = vpop.f32.mrf.mxu0  ;;  %v307_v10 = vpop.f32.mrf.mxu1 }
  0xa0   : > { %342 = vst.msk [vmem:[%s771_s24 + $0x8] sm:$0xff] %vm340_vm2, %v295_v9  ;;  %v863_v11 = vpop.f32.mrf.mxu2  ;;  %v865_v12 = vpop.f32.mrf.mxu3  ;;  %v358_v21 = vmul.f32 %v295_v9, %v295_v9  ;;  %v362_v50 = vmul.f32 %v307_v10, %v307_v10 }
  0xa1   : > { %346 = vst.msk [vmem:[%s771_s24 + $0x28] sm:$0xff] %vm340_vm2, %v307_v10  ;;  %v365_v63 = vmul.f32 %v863_v11, %v863_v11  ;;  %v369_v25 = vmul.f32 %v865_v12, %v865_v12 }
  0xa2   : > { %349 = vst.msk [vmem:[%s771_s24 + $0x40] sm:$0xff] %vm340_vm2, %v863_v11  ;;  %v375_v28 = vsel %vm373_vm3, %v358_v21, 0.0  ;;  %v415_v29 = vsel %vm340_vm2, %v358_v21, 0.0  ;;  %v383_v61 = vsel %vm373_vm3, %v362_v50, 0.0  ;;  %v423_v62 = vsel %vm340_vm2, %v362_v50, 0.0 }
  0xa3   : > { %353 = vst.msk [vmem:[%s771_s24 + $0x60] sm:$0xff] %vm340_vm2, %v865_v12  ;;  %v376_v39 = vadd.f32 %v375_v28, %v374_v32  ;;  %v416_v40 = vadd.f32 %v415_v29, %v414_v35  ;;  %v389_v15 = vsel %vm373_vm3, %v365_v63, 0.0  ;;  %v429_v16 = vsel %vm340_vm2, %v365_v63, 0.0 }
  0xa7   : > { %v298_v17 = vpop.f32.mrf.mxu0  ;;  %v310_v18 = vpop.f32.mrf.mxu1 }
  0xa8   : > { %343 = vst.msk [vmem:[%s771_s24 + $0x10] sm:$0xff] %vm340_vm2, %v298_v17  ;;  %v880_v22 = vpop.f32.mrf.mxu2  ;;  %v882_v23 = vpop.f32.mrf.mxu3  ;;  %v359_v27 = vmul.f32 %v298_v17, %v298_v17  ;;  %v363_v57 = vmul.f32 %v310_v18, %v310_v18 }
  0xa9   : > { %347 = vst.msk [vmem:[%s771_s24 + $0x30] sm:$0xff] %vm340_vm2, %v310_v18  ;;  %v366_v13 = vmul.f32 %v880_v22, %v880_v22  ;;  %v370_v33 = vmul.f32 %v882_v23, %v882_v23 }
  0xaa   : > { %350 = vst.msk [vmem:[%s771_s24 + $0x48] sm:$0xff] %vm340_vm2, %v880_v22  ;;  %v377_v36 = vsel %vm373_vm3, %v359_v27, 0.0  ;;  %v417_v37 = vsel %vm340_vm2, %v359_v27, 0.0  ;;  %v385_v2 = vsel %vm373_vm3, %v363_v57, 0.0  ;;  %v425_v3 = vsel %vm340_vm2, %v363_v57, 0.0 }
  0xab   : > { %354 = vst.msk [vmem:[%s771_s24 + $0x68] sm:$0xff] %vm340_vm2, %v882_v23  ;;  %v378_v47 = vadd.f32 %v377_v36, %v376_v39  ;;  %v418_v48 = vadd.f32 %v417_v37, %v416_v40  ;;  %v391_v21 = vsel %vm373_vm3, %v366_v13, 0.0  ;;  %v431_v24 = vsel %vm340_vm2, %v366_v13, 0.0 }
  0xac   : > { %v397_v36 = vsel %vm373_vm3, %v369_v25, 0.0  ;;  %v437_v39 = vsel %vm340_vm2, %v369_v25, 0.0  ;;  %v399_v40 = vsel %vm373_vm3, %v370_v33, 0.0  ;;  %v439_v23 = vsel %vm340_vm2, %v370_v33, 0.0 }
  0xaf   : > { %v301_v6 = vpop.f32.mrf.mxu0  ;;  %v313_v41 = vpop.f32.mrf.mxu1 }
  0xb0   : > { %344 = vst.msk [vmem:[%s771_s24 + $0x18] sm:$0xff] %vm340_vm2, %v301_v6  ;;  %v360_v44 = vmul.f32 %v301_v6, %v301_v6  ;;  %v322_v45 = vpop.f32.mrf.mxu2  ;;  %v334_v46 = vpop.f32.mrf.mxu3  ;;  %v364_v58 = vmul.f32 %v313_v41, %v313_v41 }
  0xb1   : > { %348 = vst.msk [vmem:[%s771_s24 + $0x38] sm:$0xff] %vm340_vm2, %v313_v41  ;;  %v367_v17 = vmul.f32 %v322_v45, %v322_v45  ;;  %v371_v12 = vmul.f32 %v334_v46, %v334_v46 }
  0xb2   : > { %v379_v51 = vsel %vm373_vm3, %v360_v44, 0.0  ;;  %v419_v52 = vsel %vm340_vm2, %v360_v44, 0.0  ;;  %351 = vst.msk [vmem:[%s771_s24 + $0x50] sm:$0xff] %vm340_vm2, %v322_v45  ;;  %v387_v4 = vsel %vm373_vm3, %v364_v58, 0.0  ;;  %v427_v5 = vsel %vm340_vm2, %v364_v58, 0.0 }
  0xb3   : > { %v380_v53 = vadd.f32 %v379_v51, %v378_v47  ;;  %v420_v54 = vadd.f32 %v419_v52, %v418_v48  ;;  %355 = vst.msk [vmem:[%s771_s24 + $0x70] sm:$0xff] %vm340_vm2, %v334_v46  ;;  %v393_v27 = vsel %vm373_vm3, %v367_v17, 0.0  ;;  %v433_v28 = vsel %vm340_vm2, %v367_v17, 0.0  ;;  %v523_v51 = vpop.xlane.xlu1 %522 }
  0xb4   : > { %v401_v42 = vsel %vm373_vm3, %v371_v12, 0.0  ;;  %v441_v46 = vsel %vm340_vm2, %v371_v12, 0.0 }
  0xb5   : > { %v382_v59 = vadd.f32 %v381_v55, %v380_v53  ;;  %v422_v60 = vadd.f32 %v421_v56, %v420_v54  ;;  %v524_v53 = vrot.slane %v523_v51, 4 }
  0xb7   : > { %v384_v0 = vadd.f32 %v383_v61, %v382_v59  ;;  %v424_v1 = vadd.f32 %v423_v62, %v422_v60  ;;  %v525_v56 = vadd.f32 %v524_v53, %v523_v51 }
  0xb8   : > { %v325_v7 = vpop.f32.mrf.mxu2  ;;  %v337_v8 = vpop.f32.mrf.mxu3 }
  0xb9   : > { %v386_v9 = vadd.f32 %v385_v2, %v384_v0  ;;  %v426_v10 = vadd.f32 %v425_v3, %v424_v1  ;;  %352 = vst.msk [vmem:[%s771_s24 + $0x58] sm:$0xff] %vm340_vm2, %v325_v7  ;;  %v368_v18 = vmul.f32 %v325_v7, %v325_v7  ;;  %v372_v37 = vmul.f32 %v337_v8, %v337_v8 }
  0xba   : > { %356 = vst.msk [vmem:[%s771_s24 + $0x78] sm:$0xff] %vm340_vm2, %v337_v8  ;;  %v526_v59 = vrot.slane %v525_v56, 2 }
  0xbb   : > { %v388_v11 = vadd.f32 %v387_v4, %v386_v9  ;;  %v428_v14 = vadd.f32 %v427_v5, %v426_v10  ;;  %v395_v29 = vsel %vm373_vm3, %v368_v18, 0.0  ;;  %v435_v30 = vsel %vm340_vm2, %v368_v18, 0.0  ;;  %v531_v9 = vld [vmem:[#allocation2] sm:$0x1] }
  0xbc   : > { %v403_v43 = vsel %vm373_vm3, %v372_v37, 0.0  ;;  %v443_v49 = vsel %vm340_vm2, %v372_v37, 0.0  ;;  %v527_v1 = vadd.f32 %v526_v59, %v525_v56 }
  0xbd   : > { %v390_v19 = vadd.f32 %v389_v15, %v388_v11  ;;  %v430_v20 = vadd.f32 %v429_v16, %v428_v14 }
  0xbe   : > { %v528_v4 = vrot.slane %v527_v1, 1 }
  0xbf   : > { %v392_v22 = vadd.f32 %v391_v21, %v390_v19  ;;  %v432_v26 = vadd.f32 %v431_v24, %v430_v20 }
  0xc0   : > { %v529_v8 = vadd.f32 %v528_v4, %v527_v1 }
  0xc1   : > { %v394_v31 = vadd.f32 %v393_v27, %v392_v22  ;;  %v434_v32 = vadd.f32 %v433_v28, %v432_v26 }
  0xc3   : > { %v396_v34 = vadd.f32 %v395_v29, %v394_v31  ;;  %v436_v35 = vadd.f32 %v435_v30, %v434_v32 }
  0xc5   : > { %v398_v38 = vadd.f32 %v397_v36, %v396_v34  ;;  %v438_v6 = vadd.f32 %v437_v39, %v436_v35 }
  0xc7   : > { %v400_v41 = vadd.f32 %v399_v40, %v398_v38  ;;  %v440_v47 = vadd.f32 %v439_v23, %v438_v6 }
  0xc9   : > { %v402_v44 = vadd.f32 %v401_v42, %v400_v41  ;;  %v442_v48 = vadd.f32 %v441_v46, %v440_v47 }
  0xcb   : > { %v404_v45 = vadd.f32 %v403_v43, %v402_v44  ;;  %v444_v50 = vadd.f32 %v443_v49, %v442_v48 }
  0xcd   : > { %405 = vadd.xlane.f32.xlu0 %v404_v45 }
  0xd5   : > { %445 = vadd.xlane.f32.xlu0 %v444_v50 }
 0x140   : > { %v406_v52 = vpop.xlane.xlu0 %405 }
 0x141   : > { %v407_v54 = vrot.slane %v406_v52, 4 }
 0x143   : > { %v408_v55 = vadd.f32 %v407_v54, %v406_v52 }
 0x145   : > { %v409_v57 = vrot.slane %v408_v55, 2 }
 0x147   : > { %v410_v58 = vadd.f32 %v409_v57, %v408_v55 }
 0x148   : > { %v446_v60 = vpop.xlane.xlu0 %445 }
 0x149   : > { %v447_v61 = vrot.slane %v446_v60, 4  ;;  %v411_v62 = vrot.slane %v410_v58, 1 }
 0x14b   : > { %v448_v63 = vadd.f32 %v447_v61, %v446_v60  ;;  %v412_v0 = vadd.f32 %v411_v62, %v410_v58 }
 0x14d   : > { %v449_v2 = vrot.slane %v448_v63, 2  ;;  %662 = vpush %v412_v0 }
 0x14f   : > { %v450_v3 = vadd.f32 %v449_v2, %v448_v63 }
 0x151   : > { %v451_v5 = vrot.slane %v450_v3, 1 }
 0x153   : > { %v452_v7 = vadd.f32 %v451_v5, %v450_v3 }
 0x155   : > { %664 = vpush %v452_v7 }
 0x156   : > { %666 = vpush %v529_v8 }
 0x17e   : > { %s663_s9 = spop %662 }
 0x186   : > { %s665_s10 = spop %664 }
 0x187   : > { %s454_s11 = ssub.f32 %s663_s9, %s665_s10  ;;  %s667_s12 = spop %666 }
 0x189   : > { %s532_s13 = ssub.f32 %s454_s11, %s667_s12 }
 0x18b   : > { %s533_s18 = smul.f32 0.5, %s532_s13 }
 0x18d   : > { %v534_v10 = vstv %s533_s18 }
 0x18e   : > { %v535_v13 = vadd.f32 %v534_v10, %v531_v9 }
 0x190   : > { %537 = vst.msk [vmem:[#allocation2] sm:$0x1] %vm536_vm4, %v535_v13 }
 0x191   : > { %669 = dma.vmem_to_hbm [thread:$0]  (%p672_p5), %s554_s17, 16, %s556_s21, [#allocation3]  }
 0x192   : > { %718 = dma.done.wait (%p672_p5), [#allocation3], 16  }
 0x193   : > { %720 = vsyncadd (%p672_p5), [#allocation3], 4294967280 }
 0x194 PF: > { %s16_s15 = sadd.s32 1, %s723_s15  }
 0x195   : > { %p13_p6 = scmp.ge.s32.totalorder %s16_s15, 6  }
 0x197   :  { %15 = sbr.rel (!%p13_p6) target bundleno = 1 (0x1), region = 75 }
 0x19c   :  { %577 = vsyncpa [#allocation3], 1 }
 0x19d   :  { %579 = vsyncpa [#allocation3 + $0x1], 1 }

</bundles_post_ra>
